<compile_context>
chip_gen: v7x
topology: tpu7x:2x2x1
jax: 0.10.0
libtpu: 0.0.40
codegen_flags: <defaults>
</compile_context>

<pallas_src>
import functools

import jax
import jax.numpy as jnp
import numpy as np
from jax.experimental import pallas as pl
from jax.experimental.pallas import tpu as pltpu


def _make_kernel(H, W, bt, C):
    HpW = H + W
    inv_w = 1.0 / float(W)
    inv_h = 1.0 / float(H)

    def kernel(x_ref, a_ref, w1t_ref, w2t_ref, o_ref, acc_ref):
        # x_ref: (bt*C, hw_t) native dtype;  a_ref: (hw_t, H+W) 0/1 sum matrix (native dtype)
        # w1t: (C, Cr) f32;  w2t: (Cr, C) f32;  o_ref: (1, bt, C);  acc: (bt*C, H+W) f32
        k = pl.program_id(1)

        @pl.when(k == 0)
        def _init():
            acc_ref[...] = jnp.zeros_like(acc_ref)

        # One MXU matmul produces both pooled sums for the whole (bt, C) block:
        # columns [0, H) hold sum-over-W (indexed by h), columns [H, H+W) hold
        # sum-over-H (indexed by w). Native-dtype inputs, f32 accumulation.
        acc_ref[...] += jnp.dot(x_ref[...], a_ref[...],
                                preferred_element_type=jnp.float32)

        @pl.when(k == pl.num_programs(1) - 1)
        def _finalize():
            sums = acc_ref[...].reshape(bt, C, HpW)
            col = jax.lax.broadcasted_iota(jnp.int32, (bt, C, HpW), 2)
            neg = jnp.float32(-jnp.inf)
            # max over sums, then scale by the positive constant 1/W (1/H): exact
            # w.r.t. mean-then-max (monotone) and keeps f32 precision on the result.
            v1 = jnp.max(jnp.where(col < H, sums, neg), axis=2) * inv_w   # (bt, C)
            v2 = jnp.max(jnp.where(col >= H, sums, neg), axis=2) * inv_h  # (bt, C)

            # Shared MLP, both paths fused into one (2*bt, C) matmul pair (tiny filler).
            v = jnp.concatenate([v1, v2], axis=0)                         # (2*bt, C)
            hid = jnp.maximum(
                jnp.dot(v, w1t_ref[...], preferred_element_type=jnp.float32), 0.0)
            y = jnp.dot(hid, w2t_ref[...], preferred_element_type=jnp.float32)
            out = jax.nn.sigmoid(y[:bt] + y[bt:])                         # (bt, C)
            o_ref[0] = out.astype(o_ref.dtype)

    return kernel


@functools.lru_cache(maxsize=None)
def _pool_sum_matrix(H, W):
    # Host-side numpy constant: rows indexed by s = h*W + w.
    #   columns [0, H):   1 at column h  -> matmul gives sum over W for each h
    #   columns [H, H+W): 1 at column w  -> matmul gives sum over H for each w
    # 0/1 entries are exact in any float dtype; the 1/W, 1/H scales stay in f32.
    eye_h = np.repeat(np.eye(H, dtype=np.float32), W, axis=0)   # (HW, H)
    eye_w = np.tile(np.eye(W, dtype=np.float32), (H, 1))        # (HW, W)
    return np.concatenate([eye_h, eye_w], axis=1)               # (HW, H+W)


def _tpu_params():
    try:
        kind = jax.devices()[0].device_kind.lower()
    except Exception:
        kind = ""
    multi_tc = "v7" in kind                       # v7x: 2 TensorCores per chip
    vmem_cap = (64 << 20) if multi_tc else (128 << 20)
    try:
        vmem_cap = int(pltpu.get_tpu_info().vmem_capacity_bytes)
    except Exception:
        pass
    return vmem_cap, multi_tc


def _choose_bt(B, C, per_batch_bytes, target_block_bytes, multi_tc):
    bt_fit = max(1, int(target_block_bytes // max(per_batch_bytes, 1)))
    if multi_tc and B >= 2:
        # Only multi-TC chips benefit from >=2 grid steps; on single-TC chips the
        # grid is a serial loop, so keep the fattest block that fits instead.
        bt_fit = min(bt_fit, max(1, B // 2))
    divisors = [d for d in range(1, B + 1) if B % d == 0]
    valid = [d for d in divisors if (d * C) % 8 == 0 or d == B]   # (8,128) sublane rule
    ok = [d for d in valid if d <= bt_fit]
    return max(ok) if ok else min(valid)


def cattention(x, w1, w2, *, bt=None, block_bytes=None):
    """x: (B, C, H, W); w1: (C//r, C); w2: (C, C//r). Returns (B, C, 1, 1)."""
    B, C, H, W = x.shape
    Cr = w1.shape[0]
    HW = H * W
    HpW = H + W
    itemsize = jnp.dtype(x.dtype).itemsize
    per_batch_bytes = max(C * HW * itemsize, 1)

    vmem_cap, multi_tc = _tpu_params()
    usable_vmem = (vmem_cap * 3) // 4             # headroom for Mosaic internals
    if block_bytes is None:
        block_bytes = min(12 << 20, usable_vmem // 4)   # fat blocks amortize per-step cost

    if bt is None or bt < 1 or B % bt != 0:
        bt = _choose_bt(B, C, per_batch_bytes, block_bytes, multi_tc)
    nb = B // bt                                  # bt divides B -> no jnp.pad HBM round-trip

    # Optional chunking of the HW axis ("arbitrary" reduction axis) so the x block
    # stays within the VMEM budget even for large C*H*W images (important on v7x).
    hw_t, n_hw = HW, 1
    if bt * per_batch_bytes > block_bytes and HW % 128 == 0 and HW > 128:
        m = HW // 128
        cap_mult = max(1, min(m, int(block_bytes // max(bt * C * itemsize * 128, 1))))
        mult = 1
        for d in range(1, m + 1):
            if m % d == 0 and d <= cap_mult:
                mult = d
        hw_t = 128 * mult
        n_hw = HW // hw_t

    x_rows = x.reshape(B * C, HW)                 # free reshape of contiguous NCHW
    a_sum = jnp.asarray(_pool_sum_matrix(H, W)).astype(x.dtype)
    w1t = w1.astype(jnp.float32).T                # (C, Cr)
    w2t = w2.astype(jnp.float32).T                # (Cr, C)

    # VMEM budget: double-buffered inputs/outputs + f32 accumulator + temporaries.
    acc_bytes = bt * C * HpW * 4
    vmem_need = (2 * (bt * C * hw_t * itemsize + hw_t * HpW * itemsize + bt * C * itemsize)
                 + 4 * 4 * C * Cr + 5 * acc_bytes + (2 << 20))
    vmem_limit = int(min(max(vmem_need, min(32 << 20, usable_vmem)), usable_vmem))

    flops = 2 * B * C * HW * HpW + 8 * B * C * Cr
    bytes_accessed = (B * C * HW * itemsize + HW * HpW * itemsize
                      + 8 * C * Cr + B * C * itemsize)
    cost = pl.CostEstimate(flops=flops, transcendentals=B * C,
                           bytes_accessed=bytes_accessed)

    kernel = _make_kernel(H, W, bt, C)

    out = pl.pallas_call(
        kernel,
        out_shape=jax.ShapeDtypeStruct((nb, bt, C), x.dtype),
        grid_spec=pltpu.PrefetchScalarGridSpec(
            num_scalar_prefetch=0,
            grid=(nb, n_hw),
            in_specs=[
                pl.BlockSpec((bt * C, hw_t), lambda b, k: (b, k)),
                pl.BlockSpec((hw_t, HpW), lambda b, k: (k, 0)),
                pl.BlockSpec((C, Cr), lambda b, k: (0, 0)),
                pl.BlockSpec((Cr, C), lambda b, k: (0, 0)),
            ],
            out_specs=pl.BlockSpec((1, bt, C), lambda b, k: (b, 0, 0)),
            scratch_shapes=[pltpu.VMEM((bt * C, HpW), jnp.float32)],
        ),
        compiler_params=pltpu.CompilerParams(
            dimension_semantics=("parallel", "arbitrary"),
            vmem_limit_bytes=vmem_limit),
        cost_estimate=cost,
    )(x_rows, a_sum, w1t, w2t)

    return out.reshape(B, C, 1, 1)


def cattention_ref(x, w1, w2):
    """Pure-JAX reference mirroring the PyTorch forward."""
    xf = x.astype(jnp.float32)
    v1 = jnp.max(jnp.mean(xf, axis=3), axis=2)    # mean over W, max over H -> (B, C)
    v2 = jnp.max(jnp.mean(xf, axis=2), axis=2)    # mean over H, max over W -> (B, C)

    def mlp(v):
        h = jnp.maximum(v @ w1.T, 0.0)
        return h @ w2.T

    out = jax.nn.sigmoid(mlp(v1) + mlp(v2))       # (B, C)
    return out[:, :, None, None]


if __name__ == "__main__":
    key = jax.random.PRNGKey(0)

    # (B, C, H, W, ratio, dtype, wrapper kwargs, tolerance)
    configs = [
        (2, 32, 16, 16, 16, jnp.float32, {}, 2e-5),
        (5, 32, 8, 8, 16, jnp.float32, {}, 2e-5),      # non-trivial divisor-bt path
        (2, 32, 16, 16, 16, jnp.float32, {"block_bytes": 16 << 10}, 2e-5),  # HW-chunked path
        (2, 32, 16, 16, 16, jnp.bfloat16, {}, 1e-2),   # native-bf16 MXU path (no f32 cast)
    ]
    for (B, C, H, W, ratio, dt, kw, tol) in configs:
        Cr = max(C // ratio, 1)
        key, kx, k1, k2 = jax.random.split(key, 4)
        x = jax.random.normal(kx, (B, C, H, W), dtype=jnp.float32).astype(dt)
        # fc1: Conv2d(C, C//r, 1, bias=False); fc2: Conv2d(C//r, C, 1, bias=False),
        # with the 1x1 kernels squeezed to 2D weight matrices.
        w1 = jax.random.normal(k1, (Cr, C), dtype=jnp.float32) * 0.1
        w2 = jax.random.normal(k2, (C, Cr), dtype=jnp.float32) * 0.1

        out = jax.block_until_ready(cattention(x, w1, w2, **kw))
        ref = cattention_ref(x, w1, w2)
        np.testing.assert_allclose(np.asarray(out.astype(jnp.float32)),
                                   np.asarray(ref), rtol=tol, atol=tol)

    print("KERNEL_OK")
</pallas_src>

<mosaic_0001>
module attributes {stable_mosaic.version = 11 : i64} {
  func.func @kernel(%arg0: i32, %arg1: i32, %arg2: memref<64x256xf32, #tpu.memory_space<vmem>>, %arg3: memref<256x32xf32, #tpu.memory_space<vmem>>, %arg4: memref<32x2xf32, #tpu.memory_space<vmem>>, %arg5: memref<2x32xf32, #tpu.memory_space<vmem>>, %arg6: memref<1x2x32xf32, #tpu.memory_space<vmem>>, %arg7: memref<64x32xf32, #tpu.memory_space<vmem>>) attributes {dimension_semantics = [#tpu.dimension_semantics<parallel>, #tpu.dimension_semantics<arbitrary>], iteration_bounds = array<i64: 1, 1>, scalar_prefetch = 0 : i64, scratch_operands = 1 : i64, tpu.core_type = #tpu.core_type<tc>, window_params = [{transform_indices = @transform_0, window_bounds = array<i64: 64, 256>}, {transform_indices = @transform_1, window_bounds = array<i64: 256, 32>}, {pipeline_mode = #tpu.pipeline_mode<synchronous>, transform_indices = @transform_2, window_bounds = array<i64: 32, 2>}, {pipeline_mode = #tpu.pipeline_mode<synchronous>, transform_indices = @transform_3, window_bounds = array<i64: 2, 32>}, {transform_indices = @transform_4, window_bounds = array<i64: 1, 2, 32>}]} {
    %c0_i32 = arith.constant 0 : i32
    %0 = arith.cmpi eq, %arg1, %c0_i32 : i32
    %1 = arith.extui %0 : i1 to i32
    %c0_i32_0 = arith.constant 0 : i32
    %2 = arith.cmpi ne, %1, %c0_i32_0 : i32
    scf.if %2 {
      %cst_10 = arith.constant 0.000000e+00 : f32
      %12 = vector.broadcast %cst_10 : f32 to vector<64x32xf32>
      %c0_11 = arith.constant 0 : index
      %c0_12 = arith.constant 0 : index
      %13 = vector.load %arg7[%c0_11, %c0_12] : memref<64x32xf32, #tpu.memory_space<vmem>>, vector<64x32xf32>
      tpu.vector_store %arg7[%c0_11, %c0_12], %12 {strides = array<i32>} : memref<64x32xf32, #tpu.memory_space<vmem>>, vector<64x32xf32>,
    } else {
    }
    %c0 = arith.constant 0 : index
    %c0_1 = arith.constant 0 : index
    %3 = vector.load %arg7[%c0, %c0_1] : memref<64x32xf32, #tpu.memory_space<vmem>>, vector<64x32xf32>
    %c0_2 = arith.constant 0 : index
    %c0_3 = arith.constant 0 : index
    %4 = vector.load %arg2[%c0_2, %c0_3] : memref<64x256xf32, #tpu.memory_space<vmem>>, vector<64x256xf32>
    %c0_4 = arith.constant 0 : index
    %c0_5 = arith.constant 0 : index
    %5 = vector.load %arg3[%c0_4, %c0_5] : memref<256x32xf32, #tpu.memory_space<vmem>>, vector<256x32xf32>
    %cst = arith.constant dense<0.000000e+00> : vector<64x32xf32>
    %6 = tpu.matmul %4, %5, %cst {dimension_numbers = #tpu.dot_dimension_numbers<[1], [0], [0], [1], [0, 0, 1, 1], [], []>} : vector<64x256xf32>, vector<256x32xf32>, vector<64x32xf32> -> vector<64x32xf32>
    %7 = arith.addf %3, %6 : vector<64x32xf32>
    %c0_6 = arith.constant 0 : index
    %c0_7 = arith.constant 0 : index
    %8 = vector.load %arg7[%c0_6, %c0_7] : memref<64x32xf32, #tpu.memory_space<vmem>>, vector<64x32xf32>
    tpu.vector_store %arg7[%c0_6, %c0_7], %7 {strides = array<i32>} : memref<64x32xf32, #tpu.memory_space<vmem>>, vector<64x32xf32>,
    %c0_i32_8 = arith.constant 0 : i32
    %9 = arith.cmpi eq, %arg1, %c0_i32_8 : i32
    %10 = arith.extui %9 : i1 to i32
    %c0_i32_9 = arith.constant 0 : i32
    %11 = arith.cmpi ne, %10, %c0_i32_9 : i32
    scf.if %11 {
      %c0_10 = arith.constant 0 : index
      %c0_11 = arith.constant 0 : index
      %12 = vector.load %arg7[%c0_10, %c0_11] : memref<64x32xf32, #tpu.memory_space<vmem>>, vector<64x32xf32>
      %13 = vector.shape_cast %12 : vector<64x32xf32> to vector<2x32x32xf32>
      %14 = tpu.iota {dimensions = array<i32: 2>} : vector<2x32x32xi32>
      %c16_i32 = arith.constant 16 : i32
      %15 = vector.broadcast %c16_i32 : i32 to vector<2x32x32xi32>
      %16 = arith.cmpi slt, %14, %15 : vector<2x32x32xi32>
      %cst_12 = arith.constant 0xFF800000 : f32
      %17 = vector.broadcast %cst_12 : f32 to vector<2x32x32xf32>
      %18 = arith.select %16, %13, %17 : vector<2x32x32xi1>, vector<2x32x32xf32>
      %cst_13 = arith.constant dense<0xFF800000> : vector<2x32xf32>
      %19 = vector.multi_reduction <maximumf>, %18, %cst_13 [2] : vector<2x32x32xf32> to vector<2x32xf32>
      %cst_14 = arith.constant 6.250000e-02 : f32
      %20 = vector.broadcast %cst_14 : f32 to vector<2x32xf32>
      %21 = arith.mulf %19, %20 : vector<2x32xf32>
      %c16_i32_15 = arith.constant 16 : i32
      %22 = vector.broadcast %c16_i32_15 : i32 to vector<2x32x32xi32>
      %23 = arith.cmpi sge, %14, %22 : vector<2x32x32xi32>
      %cst_16 = arith.constant 0xFF800000 : f32
      %24 = vector.broadcast %cst_16 : f32 to vector<2x32x32xf32>
      %25 = arith.select %23, %13, %24 : vector<2x32x32xi1>, vector<2x32x32xf32>
      %cst_17 = arith.constant dense<0xFF800000> : vector<2x32xf32>
      %26 = vector.multi_reduction <maximumf>, %25, %cst_17 [2] : vector<2x32x32xf32> to vector<2x32xf32>
      %cst_18 = arith.constant 6.250000e-02 : f32
      %27 = vector.broadcast %cst_18 : f32 to vector<2x32xf32>
      %28 = arith.mulf %26, %27 : vector<2x32xf32>
      %29 = tpu.concatenate %21, %28 in 0 : vector<2x32xf32>, vector<2x32xf32> -> vector<4x32xf32>
      %c0_19 = arith.constant 0 : index
      %c0_20 = arith.constant 0 : index
      %30 = vector.load %arg4[%c0_19, %c0_20] : memref<32x2xf32, #tpu.memory_space<vmem>>, vector<32x2xf32>
      %cst_21 = arith.constant dense<0.000000e+00> : vector<4x2xf32>
      %31 = tpu.matmul %29, %30, %cst_21 {dimension_numbers = #tpu.dot_dimension_numbers<[1], [0], [0], [1], [0, 0, 1, 1], [], []>} : vector<4x32xf32>, vector<32x2xf32>, vector<4x2xf32> -> vector<4x2xf32>
      %cst_22 = arith.constant 0.000000e+00 : f32
      %32 = vector.broadcast %cst_22 : f32 to vector<4x2xf32>
      %33 = arith.maximumf %31, %32 : vector<4x2xf32>
      %c0_23 = arith.constant 0 : index
      %c0_24 = arith.constant 0 : index
      %34 = vector.load %arg5[%c0_23, %c0_24] : memref<2x32xf32, #tpu.memory_space<vmem>>, vector<2x32xf32>
      %cst_25 = arith.constant dense<0.000000e+00> : vector<4x32xf32>
      %35 = tpu.matmul %33, %34, %cst_25 {dimension_numbers = #tpu.dot_dimension_numbers<[1], [0], [0], [1], [0, 0, 1, 1], [], []>} : vector<4x2xf32>, vector<2x32xf32>, vector<4x32xf32> -> vector<4x32xf32>
      %36 = vector.extract_strided_slice %35 {offsets = [0, 0], sizes = [2, 32], strides = [1, 1]} : vector<4x32xf32> to vector<2x32xf32>
      %37 = vector.extract_strided_slice %35 {offsets = [2, 0], sizes = [2, 32], strides = [1, 1]} : vector<4x32xf32> to vector<2x32xf32>
      %38 = arith.addf %36, %37 : vector<2x32xf32>
      %39 = arith.negf %38 : vector<2x32xf32>
      %40 = math.exp %39 : vector<2x32xf32>
      %cst_26 = arith.constant 1.000000e+00 : f32
      %41 = vector.broadcast %cst_26 : f32 to vector<2x32xf32>
      %42 = arith.addf %41, %40 : vector<2x32xf32>
      %43 = arith.divf %41, %42 : vector<2x32xf32>
      %c0_27 = arith.constant 0 : index
      %c0_28 = arith.constant 0 : index
      %c0_29 = arith.constant 0 : index
      %44 = vector.load %arg6[%c0_27, %c0_28, %c0_29] : memref<1x2x32xf32, #tpu.memory_space<vmem>>, vector<1x2x32xf32>
      %45 = vector.shape_cast %44 : vector<1x2x32xf32> to vector<2x32xf32>
      %46 = vector.shape_cast %43 : vector<2x32xf32> to vector<1x2x32xf32>
      tpu.vector_store %arg6[%c0_27, %c0_28, %c0_29], %46 {strides = array<i32>} : memref<1x2x32xf32, #tpu.memory_space<vmem>>, vector<1x2x32xf32>,
    } else {
    }
    return
  }
  func.func @transform_0(%arg0: i32, %arg1: i32) -> (i32, i32) {
    %c0_i32 = arith.constant 0 : i32
    return %arg0, %arg1 : i32, i32
  }
  func.func @transform_1(%arg0: i32, %arg1: i32) -> (i32, i32) {
    %c0_i32 = arith.constant 0 : i32
    %c0_i32_0 = arith.constant 0 : i32
    return %arg1, %c0_i32 : i32, i32
  }
  func.func @transform_2(%arg0: i32, %arg1: i32) -> (i32, i32) {
    %c0_i32 = arith.constant 0 : i32
    %c0_i32_0 = arith.constant 0 : i32
    %c0_i32_1 = arith.constant 0 : i32
    return %c0_i32, %c0_i32_0 : i32, i32
  }
  func.func @transform_3(%arg0: i32, %arg1: i32) -> (i32, i32) {
    %c0_i32 = arith.constant 0 : i32
    %c0_i32_0 = arith.constant 0 : i32
    %c0_i32_1 = arith.constant 0 : i32
    return %c0_i32, %c0_i32_0 : i32, i32
  }
  func.func @transform_4(%arg0: i32, %arg1: i32) -> (i32, i32, i32) {
    %c0_i32 = arith.constant 0 : i32
    %c0_i32_0 = arith.constant 0 : i32
    %c0_i32_1 = arith.constant 0 : i32
    return %arg0, %c0_i32, %c0_i32_0 : i32, i32, i32
  }
}

</mosaic_0001>

<bundles_post_ra>
// kernel: tpu_custom_call.1
= control target key start
LH: loop header
LB: loop body
LE: loop exit
PB: predicated region body
PF: predicated region fallthrough
CT: control target
= control target key end

     0   :  { %s1062_s0 = inlined_call_operand.vmem [shape: f32[64,256], index: 0, kind: input, shape index: {}]   ;;  %s1063_s1 = inlined_call_operand.vmem [shape: f32[256,32], index: 1, kind: input, shape index: {}]   ;;  %s1064_s2 = inlined_call_operand.vmem [shape: f32[32,2], index: 2, kind: input, shape index: {}]   ;;  %s1065_s3 = inlined_call_operand.vmem [shape: f32[2,32], index: 3, kind: input, shape index: {}]   ;;  %s1066_s4 = inlined_call_operand.hbm [shape: f32[1,2,32], index: 4, kind: output, shape index: {}]  }
   0x1   :  { %v71_v0 = vld [vmem:[%s1063_s1 + $0x80] sm:$0xff]  ;;  %v72_v1 = vld [vmem:[%s1063_s1 + $0x88] sm:$0xff]  ;;  %v73_v5 = vld [vmem:[%s1063_s1 + $0x90] sm:$0xff] }
   0x2   :  { %v55_v2 = vld [vmem:[%s1063_s1] sm:$0xff]  ;;  %v675_v3 = vpack.c.bf16 %v72_v1, %v71_v0  ;;  %v56_v4 = vld [vmem:[%s1063_s1 + $0x8] sm:$0xff]  ;;  %v74_v6 = vld [vmem:[%s1063_s1 + $0x98] sm:$0xff] }
   0x3   :  { %v677_v7 = vpack.c.bf16 %v56_v4, %v55_v2  ;;  %v679_v8 = vpack.c.bf16 %v74_v6, %v73_v5  ;;  %v57_v9 = vld [vmem:[%s1063_s1 + $0x10] sm:$0xff]  ;;  %v58_v10 = vld [vmem:[%s1063_s1 + $0x18] sm:$0xff]  ;;  %v75_v11 = vld [vmem:[%s1063_s1 + $0xa0] sm:$0xff] }
   0x4   :  { %676 = vmatprep.subr.bf16.mxu0 %v675_v3  ;;  %713 = vmatprep.subr.bf16.mxu1 %v675_v3  ;;  %v76_v12 = vld [vmem:[%s1063_s1 + $0xa8] sm:$0xff]  ;;  %v681_v13 = vpack.c.bf16 %v58_v10, %v57_v9  ;;  %v59_v15 = vld [vmem:[%s1063_s1 + $0x20] sm:$0xff]  ;;  %v77_v17 = vld [vmem:[%s1063_s1 + $0xb0] sm:$0xff] }
   0x5   :  { %678 = vmatpush3.bf16.msra.mxu0 %v677_v7  ;;  %721 = vmatpush3.bf16.msra.mxu1 %v677_v7  ;;  %v683_v14 = vpack.c.bf16 %v76_v12, %v75_v11  ;;  %v60_v16 = vld [vmem:[%s1063_s1 + $0x28] sm:$0xff]  ;;  %v78_v18 = vld [vmem:[%s1063_s1 + $0xb8] sm:$0xff]  ;;  %v61_v21 = vld [vmem:[%s1063_s1 + $0x30] sm:$0xff] }
   0x6   :  { %680 = vmatprep.subr.bf16.mxu0 %v679_v8  ;;  %714 = vmatprep.subr.bf16.mxu1 %v679_v8  ;;  %v685_v19 = vpack.c.bf16 %v60_v16, %v59_v15  ;;  %v687_v20 = vpack.c.bf16 %v78_v18, %v77_v17  ;;  %v62_v22 = vld [vmem:[%s1063_s1 + $0x38] sm:$0xff]  ;;  %v79_v23 = vld [vmem:[%s1063_s1 + $0xc0] sm:$0xff]  ;;  %v80_v24 = vld [vmem:[%s1063_s1 + $0xc8] sm:$0xff] }
   0x7   :  { %v40_v25 = vld [vmem:[%s1062_s0 + $0x8] sm:$0xff]  ;;  %v50_v26 = vld [vmem:[%s1062_s0 + $0x58] sm:$0xff]  ;;  %v689_v27 = vpack.c.bf16 %v62_v22, %v61_v21  ;;  %v691_v28 = vpack.c.bf16 %v80_v24, %v79_v23  ;;  %v63_v29 = vld [vmem:[%s1063_s1 + $0x40] sm:$0xff] }
   0x8   :  { %151 = vmatprep.mubr.f32.mxu0 %v40_v25  ;;  %v64_v30 = vld [vmem:[%s1063_s1 + $0x48] sm:$0xff]  ;;  %v81_v31 = vld [vmem:[%s1063_s1 + $0xd0] sm:$0xff]  ;;  %v82_v32 = vld [vmem:[%s1063_s1 + $0xd8] sm:$0xff]  ;;  %176 = vmatprep.mubr.f32.mxu1 %v50_v26 }
   0x9   :  { %682 = vmatpush3.bf16.msra.mxu0 %v681_v13  ;;  %722 = vmatpush3.bf16.msra.mxu1 %v681_v13  ;;  %v693_v33 = vpack.c.bf16 %v64_v30, %v63_v29 }
   0xa   :  { %684 = vmatprep.subr.bf16.mxu0 %v683_v14  ;;  %715 = vmatprep.subr.bf16.mxu1 %v683_v14 }
   0xd   :  { %686 = vmatpush3.bf16.msra.mxu0 %v685_v19  ;;  %723 = vmatpush3.bf16.msra.mxu1 %v685_v19 }
   0xe   :  { %688 = vmatprep.subr.bf16.mxu0 %v687_v20  ;;  %716 = vmatprep.subr.bf16.mxu1 %v687_v20 }
  0x11   :  { %690 = vmatpush3.bf16.msra.mxu0 %v689_v27  ;;  %724 = vmatpush3.bf16.msra.mxu1 %v689_v27 }
  0x12   :  { %9 = vsyncpa [#allocation4], 0  ;;  %692 = vmatprep.subr.bf16.mxu0 %v691_v28  ;;  %717 = vmatprep.subr.bf16.mxu1 %v691_v28  ;;  %v695_v34 = vpack.c.bf16 %v82_v32, %v81_v31  ;;  %v65_v35 = vld [vmem:[%s1063_s1 + $0x50] sm:$0xff]  ;;  %v66_v36 = vld [vmem:[%s1063_s1 + $0x58] sm:$0xff]  ;;  %vm22_vm0 = vcmask 261120   ;;  %v761_v0 = vmov 0.0   ;;  %v220_v9 = vlaneseq }
  0x13   :  { %v83_v37 = vld [vmem:[%s1063_s1 + $0xe0] sm:$0xff]  ;;  %v84_v38 = vld [vmem:[%s1063_s1 + $0xe8] sm:$0xff]  ;;  %v697_v39 = vpack.c.bf16 %v66_v36, %v65_v35  ;;  %v85_v43 = vld [vmem:[%s1063_s1 + $0xf0] sm:$0xff]  ;;  %23 = vst.msk [vmem:[#allocation2] sm:$0xff] %vm22_vm0, %v761_v0  ;;  %vm763_vm3 = vmmov 0   ;;  %vm321_vm4 = vcmask 130112  }
  0x14   :  { %v699_v40 = vpack.c.bf16 %v84_v38, %v83_v37  ;;  %v67_v41 = vld [vmem:[%s1063_s1 + $0x60] sm:$0xff]  ;;  %v68_v42 = vld [vmem:[%s1063_s1 + $0x68] sm:$0xff]  ;;  %v86_v44 = vld [vmem:[%s1063_s1 + $0xf8] sm:$0xff]  ;;  %24 = vst.msk [vmem:[#allocation2 + $0x8] sm:$0xff] %vm22_vm0, %v761_v0  ;;  %v953_v20 = vand.u32 127, %v220_v9  ;;  %vm328_vm5 = vcmask 195712  }
  0x15   :  { %694 = vmatpush3.bf16.msra.mxu0 %v693_v33  ;;  %725 = vmatpush3.bf16.msra.mxu1 %v693_v33  ;;  %v701_v45 = vpack.c.bf16 %v68_v42, %v67_v41  ;;  %v703_v46 = vpack.c.bf16 %v86_v44, %v85_v43  ;;  %v69_v47 = vld [vmem:[%s1063_s1 + $0x70] sm:$0xff]  ;;  %v70_v48 = vld [vmem:[%s1063_s1 + $0x78] sm:$0xff]  ;;  %v39_v50 = vld [vmem:[%s1062_s0] sm:$0xff]  ;;  %25 = vst.msk [vmem:[#allocation2 + $0x10] sm:$0xff] %vm22_vm0, %v761_v0  ;;  %vm335_vm6 = vcmask 261312   ;;  %vm356_vm7 = vcmask 1041409  }
  0x16   :  { %696 = vmatprep.subr.bf16.mxu0 %v695_v34  ;;  %718 = vmatprep.subr.bf16.mxu1 %v695_v34  ;;  %v705_v49 = vpack.c.bf16 %v70_v48, %v69_v47  ;;  %v49_v51 = vld [vmem:[%s1062_s0 + $0x50] sm:$0xff]  ;;  %v42_v52 = vld [vmem:[%s1062_s0 + $0x18] sm:$0xff]  ;;  %v52_v53 = vld [vmem:[%s1062_s0 + $0x68] sm:$0xff]  ;;  %26 = vst.msk [vmem:[#allocation2 + $0x18] sm:$0xff] %vm22_vm0, %v761_v0  ;;  %vm222_vm1 = vcmp.lt.s32.totalorder %v953_v20, 16  ;;  %vm263_vm2 = vcmp.ge.s32.totalorder %v953_v20, 16 }
  0x17   :  { %v41_v54 = vld [vmem:[%s1062_s0 + $0x10] sm:$0xff]  ;;  %v51_v55 = vld [vmem:[%s1062_s0 + $0x60] sm:$0xff]  ;;  %v44_v56 = vld [vmem:[%s1062_s0 + $0x28] sm:$0xff]  ;;  %27 = vst.msk [vmem:[#allocation2 + $0x20] sm:$0xff] %vm22_vm0, %v761_v0  ;;  %vm405_vm8 = vcmask 1043459   ;;  %vm408_vm9 = vcmask 1041408  }
  0x18   :  { %v54_v57 = vld [vmem:[%s1062_s0 + $0x78] sm:$0xff]  ;;  %v43_v58 = vld [vmem:[%s1062_s0 + $0x20] sm:$0xff]  ;;  %v53_v59 = vld [vmem:[%s1062_s0 + $0x70] sm:$0xff]  ;;  %28 = vst.msk [vmem:[#allocation2 + $0x28] sm:$0xff] %vm22_vm0, %v761_v0  ;;  %vm489_vm10 = vcmask 15360   ;;  %vm576_vm11 = vcmask 254976  }
  0x19   :  { %698 = vmatpush3.bf16.msra.mxu0 %v697_v39  ;;  %726 = vmatpush3.bf16.msra.mxu1 %v697_v39  ;;  %v46_v60 = vld [vmem:[%s1062_s0 + $0x38] sm:$0xff]  ;;  %v45_v61 = vld [vmem:[%s1062_s0 + $0x30] sm:$0xff]  ;;  %v48_v62 = vld [vmem:[%s1062_s0 + $0x48] sm:$0xff]  ;;  %29 = vst.msk [vmem:[#allocation2 + $0x30] sm:$0xff] %vm22_vm0, %v761_v0 }
  0x1a   :  { %700 = vmatprep.subr.bf16.mxu0 %v699_v40  ;;  %719 = vmatprep.subr.bf16.mxu1 %v699_v40  ;;  %v47_v63 = vld [vmem:[%s1062_s0 + $0x40] sm:$0xff]  ;;  %30 = vst.msk [vmem:[#allocation2 + $0x38] sm:$0xff] %vm22_vm0, %v761_v0 }
  0x1b   :  { %v31_v3 = vld [vmem:[#allocation2] sm:$0xff]  ;;  %v32_v14 = vld [vmem:[#allocation2 + $0x8] sm:$0xff] }
  0x1c   :  { %v33_v25 = vld [vmem:[#allocation2 + $0x10] sm:$0xff] }
  0x1d   :  { %702 = vmatpush3.bf16.msra.mxu0 %v701_v45  ;;  %727 = vmatpush3.bf16.msra.mxu1 %v701_v45  ;;  %v34_v36 = vld [vmem:[#allocation2 + $0x18] sm:$0xff] }
  0x1e   :  { %704 = vmatprep.subr.bf16.mxu0 %v703_v46  ;;  %720 = vmatprep.subr.bf16.mxu1 %v703_v46  ;;  %v35_v47 = vld [vmem:[#allocation2 + $0x20] sm:$0xff] }
  0x1f   :  { %v36_v5 = vld [vmem:[#allocation2 + $0x28] sm:$0xff] }
  0x20   :  { %v37_v16 = vld [vmem:[#allocation2 + $0x30] sm:$0xff] }
  0x21   :  { %706 = vmatpush3.bf16.msra.mxu0 %v705_v49  ;;  %728 = vmatpush3.bf16.msra.mxu1 %v705_v49  ;;  %v38_v27 = vld [vmem:[#allocation2 + $0x38] sm:$0xff] }
  0x24   :  { %152 = vmatmul.mubr.f32.vlgmr.msra.gmra.mrb[0].mxu0 %v39_v50  ;;  %177 = vmatmul.mubr.f32.vlgmr.msra.gmra.mrb[0].mxu1 %v49_v51 }
  0x25   :  { %156 = vmatprep.mubr.f32.mxu0 %v42_v52  ;;  %181 = vmatprep.mubr.f32.mxu1 %v52_v53 }
  0x28   :  { %157 = vmatmul.mubr.f32.gmra.mrb[2].mxu0 %v41_v54  ;;  %182 = vmatmul.mubr.f32.gmra.mrb[2].mxu1 %v51_v55 }
  0x29   :  { %161 = vmatprep.mubr.f32.mxu0 %v44_v56  ;;  %186 = vmatprep.mubr.f32.mxu1 %v54_v57 }
  0x2c   :  { %162 = vmatmul.mubr.f32.gmra.mrb[4].mxu0 %v43_v58  ;;  %187 = vmatmul.mubr.f32.gmra.mrb[4].mxu1 %v53_v59 }
  0x2d   :  { %166 = vmatprep.mubr.f32.mxu0 %v46_v60  ;;  %667 = vmatprep.mubr.msk.f32.mxu1 %vm763_vm3, %v761_v0 }
  0x30   :  { %167 = vmatmul.mubr.f32.gmra.mrb[6].mxu0 %v45_v61 }
  0x31   :  { %171 = vmatprep.mubr.f32.mxu0 %v48_v62 }
  0x34   :  { %172 = vmatmul.mubr.f32.gmra.mrb[8].mxu0 %v47_v63 }
  0xf7   :  { %v628_v1 = vpop.f32.mrb[0].mxu0  ;;  %v643_v2 = vpop.f32.mrb[0].mxu1 }
  0xf8   :  { %v629_v4 = vpop.f32.mrb[1].mxu0  ;;  %v644_v6 = vpop.f32.mrb[1].mxu1 }
  0xf9   :  { %v630_v7 = vadd.f32 %v629_v4, %v628_v1  ;;  %v645_v8 = vadd.f32 %v644_v6, %v643_v2 }
  0xfb   :  { %v192_v10 = vadd.f32 %v630_v7, %v31_v3  ;;  %v197_v11 = vadd.f32 %v645_v8, %v36_v5  ;;  %v631_v12 = vpop.f32.mrb[2].mxu0  ;;  %v646_v13 = vpop.f32.mrb[2].mxu1 }
  0xfc   :  { %v632_v15 = vpop.f32.mrb[3].mxu0  ;;  %v647_v17 = vpop.f32.mrb[3].mxu1 }
  0xfd   :  { %201 = vst.msk [vmem:[#allocation2] sm:$0xff] %vm22_vm0, %v192_v10  ;;  %206 = vst.msk [vmem:[#allocation2 + $0x28] sm:$0xff] %vm22_vm0, %v197_v11  ;;  %v633_v18 = vadd.f32 %v632_v15, %v631_v12  ;;  %v648_v19 = vadd.f32 %v647_v17, %v646_v13 }
  0xff   :  { %v193_v21 = vadd.f32 %v633_v18, %v32_v14  ;;  %v634_v22 = vpop.f32.mrb[4].mxu0  ;;  %v198_v23 = vadd.f32 %v648_v19, %v37_v16  ;;  %v649_v24 = vpop.f32.mrb[4].mxu1 }
 0x100   :  { %v635_v26 = vpop.f32.mrb[5].mxu0  ;;  %v650_v28 = vpop.f32.mrb[5].mxu1 }
 0x101   :  { %202 = vst.msk [vmem:[#allocation2 + $0x8] sm:$0xff] %vm22_vm0, %v193_v21  ;;  %v636_v29 = vadd.f32 %v635_v26, %v634_v22  ;;  %207 = vst.msk [vmem:[#allocation2 + $0x30] sm:$0xff] %vm22_vm0, %v198_v23  ;;  %v651_v30 = vadd.f32 %v650_v28, %v649_v24  ;;  %v410_v22 = vld [vmem:[%s1064_s2] sm:$0xff]  ;;  %v411_v23 = vld [vmem:[%s1064_s2 + $0x8] sm:$0xff]  ;;  %v762_v24 = vmov 0.0|0.0  }
 0x102   :  { %707 = vmatprep.subr.bf16.mxu1 %v762_v24  ;;  %v412_v26 = vld [vmem:[%s1064_s2 + $0x10] sm:$0xff] }
 0x103   :  { %v194_v31 = vadd.f32 %v636_v29, %v33_v25  ;;  %v637_v32 = vpop.f32.mrb[6].mxu0  ;;  %v199_v33 = vadd.f32 %v651_v30, %v38_v27  ;;  %v708_v25 = vpack.c.bf16 %v411_v23, %v410_v22  ;;  %v413_v27 = vld [vmem:[%s1064_s2 + $0x18] sm:$0xff] }
 0x104   :  { %v217_v34 = vld [vmem:[#allocation2 + $0x28] sm:$0xff]  ;;  %v212_v35 = vld [vmem:[#allocation2] sm:$0xff]  ;;  %v638_v37 = vpop.f32.mrb[7].mxu0  ;;  %v711_v28 = vpack.c.bf16 %v413_v27, %v412_v26 }
 0x105   :  { %203 = vst.msk [vmem:[#allocation2 + $0x10] sm:$0xff] %vm22_vm0, %v194_v31  ;;  %v228_v38 = vsel %vm222_vm1, %v217_v34, -inf  ;;  %v223_v39 = vsel %vm222_vm1, %v212_v35, -inf  ;;  %v639_v40 = vadd.f32 %v638_v37, %v637_v32  ;;  %208 = vst.msk [vmem:[#allocation2 + $0x38] sm:$0xff] %vm22_vm0, %v199_v33  ;;  %v269_v44 = vsel %vm263_vm2, %v217_v34, -inf  ;;  %709 = vmatpush3.bf16.msra.mxu1 %v708_v25 }
 0x106   :  { %v246_v41 = vsel %vm22_vm0, %v228_v38, -inf  ;;  %v231_v42 = vsel %vm22_vm0, %v223_v39, -inf  ;;  %v264_v45 = vsel %vm263_vm2, %v212_v35, -inf  ;;  %v287_v53 = vsel %vm22_vm0, %v269_v44, -inf  ;;  %710 = vmatprep.subr.bf16.mxu1 %v762_v24 }
 0x107   :  { %247 = vmax.xlane.f32.xlu1 %v246_v41  ;;  %232 = vmax.xlane.f32.xlu0 %v231_v42  ;;  %v195_v43 = vadd.f32 %v639_v40, %v34_v36  ;;  %v640_v46 = vpop.f32.mrb[8].mxu0  ;;  %v272_v54 = vsel %vm22_vm0, %v264_v45, -inf  ;;  %v313_v37 = vshrl.u32 %v220_v9, 7  ;;  %v316_v38 = vadd.s32 4294967288, %v953_v20 }
 0x108   :  { %v641_v48 = vpop.f32.mrb[9].mxu0  ;;  %v213_v49 = vld [vmem:[#allocation2 + $0x8] sm:$0xff]  ;;  %v218_v55 = vld [vmem:[#allocation2 + $0x30] sm:$0xff]  ;;  %v323_v41 = vadd.s32 4294967280, %v953_v20  ;;  %v330_v42 = vadd.s32 4294967272, %v953_v20 }
 0x109   :  { %204 = vst.msk [vmem:[#allocation2 + $0x18] sm:$0xff] %vm22_vm0, %v195_v43  ;;  %v642_v50 = vadd.f32 %v641_v48, %v640_v46  ;;  %v265_v51 = vsel %vm263_vm2, %v213_v49, -inf  ;;  %v224_v52 = vsel %vm222_vm1, %v213_v49, -inf  ;;  %v229_v60 = vsel %vm222_vm1, %v218_v55, -inf  ;;  %712 = vmatpush3.bf16.msra.mxu1 %v711_v28 }
 0x10a   :  { %v275_v57 = vsel %vm22_vm0, %v265_v51, -inf  ;;  %v234_v58 = vsel %vm22_vm0, %v224_v52, -inf  ;;  %v249_v62 = vsel %vm22_vm0, %v229_v60, -inf  ;;  %v270_v3 = vsel %vm263_vm2, %v218_v55, -inf  ;;  %670 = vmatprep.subr.mxu1 %v761_v0 }
 0x10b   :  { %288 = vmax.xlane.f32.xlu1 %v287_v53  ;;  %273 = vmax.xlane.f32.xlu0 %v272_v54  ;;  %v196_v56 = vadd.f32 %v642_v50, %v35_v47  ;;  %v290_v7 = vsel %vm22_vm0, %v270_v3, -inf  ;;  %v319_v43 = vsub.s32 %v316_v38, %v313_v37  ;;  %v314_v44 = vsub.s32 %v953_v20, %v313_v37 }
 0x10c   :  { %v214_v59 = vld [vmem:[#allocation2 + $0x10] sm:$0xff]  ;;  %v219_v1 = vld [vmem:[#allocation2 + $0x38] sm:$0xff]  ;;  %v326_v49 = vsub.s32 %v323_v41, %v313_v37  ;;  %v333_v52 = vsub.s32 %v330_v42, %v313_v37 }
 0x10d   :  { %205 = vst.msk [vmem:[#allocation2 + $0x20] sm:$0xff] %vm22_vm0, %v196_v56  ;;  %v225_v61 = vsel %vm222_vm1, %v214_v59, -inf  ;;  %v266_v4 = vsel %vm263_vm2, %v214_v59, -inf  ;;  %v230_v5 = vsel %vm222_vm1, %v219_v1, -inf  ;;  %v271_v17 = vsel %vm263_vm2, %v219_v1, -inf }
 0x10e   :  { %v237_v63 = vsel %vm22_vm0, %v225_v61, -inf  ;;  %v278_v8 = vsel %vm22_vm0, %v266_v4, -inf  ;;  %v252_v11 = vsel %vm22_vm0, %v230_v5, -inf  ;;  %v293_v19 = vsel %vm22_vm0, %v271_v17, -inf }
 0x10f   :  { %276 = vmax.xlane.f32.xlu1 %v275_v57  ;;  %235 = vmax.xlane.f32.xlu0 %v234_v58 }
 0x110   :  { %v215_v2 = vld [vmem:[#allocation2 + $0x18] sm:$0xff] }
 0x111   :  { %v226_v6 = vsel %vm222_vm1, %v215_v2, -inf  ;;  %v267_v18 = vsel %vm263_vm2, %v215_v2, -inf }
 0x112   :  { %v240_v12 = vsel %vm22_vm0, %v226_v6, -inf  ;;  %v281_v21 = vsel %vm22_vm0, %v267_v18, -inf }
 0x113   :  { %250 = vmax.xlane.f32.xlu1 %v249_v62  ;;  %238 = vmax.xlane.f32.xlu0 %v237_v63 }
 0x114   :  { %v216_v10 = vld [vmem:[#allocation2 + $0x20] sm:$0xff] }
 0x115   :  { %v227_v13 = vsel %vm222_vm1, %v216_v10, -inf  ;;  %v268_v14 = vsel %vm263_vm2, %v216_v10, -inf }
 0x116   :  { %v243_v15 = vsel %vm22_vm0, %v227_v13, -inf  ;;  %v284_v16 = vsel %vm22_vm0, %v268_v14, -inf }
 0x117   :  { %291 = vmax.xlane.f32.xlu1 %v290_v7  ;;  %279 = vmax.xlane.f32.xlu0 %v278_v8 }
 0x11b   :  { %253 = vmax.xlane.f32.xlu1 %v252_v11  ;;  %241 = vmax.xlane.f32.xlu0 %v240_v12 }
 0x11f   :  { %244 = vmax.xlane.f32.xlu1 %v243_v15  ;;  %285 = vmax.xlane.f32.xlu0 %v284_v16 }
 0x123   :  { %294 = vmax.xlane.f32.xlu1 %v293_v19  ;;  %282 = vmax.xlane.f32.xlu0 %v281_v21 }
 0x194   :  { %v248_v29 = vpop.xlane.xlu1 %247  ;;  %v233_v30 = vpop.xlane.xlu0 %232 }
 0x195   :  { %v260_v47 = vmul.f32 0.0625, %v248_v29  ;;  %v255_v48 = vmul.f32 0.0625, %v233_v30 }
 0x197   :  { %v344_v60 = vrot.slane %v260_v47, %v319_v43  ;;  %v315_v61 = vrot.slane %v255_v48, %v314_v44 }
 0x198   :  { %v289_v31 = vpop.xlane.xlu1 %288  ;;  %v274_v32 = vpop.xlane.xlu0 %273 }
 0x199   :  { %v301_v50 = vmul.f32 0.0625, %v289_v31  ;;  %v296_v9 = vmul.f32 0.0625, %v274_v32 }
 0x19b   :  { %v393_v1 = vrot.slane %v301_v50, %v319_v43  ;;  %v370_v2 = vrot.slane %v296_v9, %v314_v44 }
 0x19c   :  { %v277_v33 = vpop.xlane.xlu1 %276  ;;  %v236_v34 = vpop.xlane.xlu0 %235 }
 0x19d   :  { %v297_v51 = vmul.f32 0.0625, %v277_v33  ;;  %v256_v53 = vmul.f32 0.0625, %v236_v34 }
 0x19f   :  { %v374_v3 = vrot.slane %v297_v51, %v319_v43  ;;  %v320_v5 = vrot.slane %v256_v53, %v319_v43 }
 0x1a0   :  { %v251_v35 = vpop.xlane.xlu1 %250  ;;  %v239_v36 = vpop.xlane.xlu0 %238 }
 0x1a1   :  { %v261_v54 = vmul.f32 0.0625, %v251_v35  ;;  %v257_v55 = vmul.f32 0.0625, %v239_v36  ;;  %v375_v21 = vsel %vm321_vm4, %v374_v3, %v370_v2  ;;  %v322_v24 = vsel %vm321_vm4, %v320_v5, %v315_v61  ;;  %v488_v36 = vld [vmem:[%s1065_s3] sm:$0x3]  ;;  %s764_s3 = smov [#allocation3]  }
 0x1a2   :  { %s584_s13 = sshll.u32 %s764_s3, 4  ;;  %s585_s13 = int_to_ptr.vmem [resolvable:$true] %s584_s13 }
 0x1a3   :  { %v349_v6 = vrot.slane %v261_v54, %v326_v49  ;;  %v327_v10 = vrot.slane %v257_v55, %v326_v49  ;;  %s737_s14 = scalar_lea.vmem %s585_s13, 32  ;;  %p742_p1 = scmp.lt.s32.totalorder %s585_s13, %s585_s13 }
 0x1a4   :  { %v292_v39 = vpop.xlane.xlu1 %291  ;;  %v280_v40 = vpop.xlane.xlu0 %279  ;;  %p738_p0 = scmp.ne.s32.totalorder %s585_s13, %s737_s14  ;;  %p743_p2 = scmp.lt.s32.totalorder %s737_s14, %s737_s14 }
 0x1a5   :  { %v298_v56 = vmul.f32 0.0625, %v280_v40  ;;  %v302_v4 = vmul.f32 0.0625, %v292_v39  ;;  %v329_v28 = vsel %vm328_vm5, %v327_v10, %v322_v24 }
 0x1a6   :  { %p744_p3 = por %p743_p2, %p742_p1 }
 0x1a7   :  { %v379_v11 = vrot.slane %v298_v56, %v326_v49  ;;  %v398_v22 = vrot.slane %v302_v4, %v326_v49 }
 0x1a8   :  { %v254_v45 = vpop.xlane.xlu1 %253  ;;  %v242_v46 = vpop.xlane.xlu0 %241  ;;  %p745_p4 = pnand %p744_p3, %p738_p0 }
 0x1a9   :  { %v262_v57 = vmul.f32 0.0625, %v254_v45  ;;  %v258_v58 = vmul.f32 0.0625, %v242_v46  ;;  %v380_v29 = vsel %vm328_vm5, %v379_v11, %v375_v21 }
 0x1ab   :  { %v354_v12 = vrot.slane %v262_v57, %v333_v52  ;;  %v334_v13 = vrot.slane %v258_v58, %v333_v52 }
 0x1ac   :  { %v245_v20 = vpop.xlane.xlu1 %244  ;;  %v286_v59 = vpop.xlane.xlu0 %285 }
 0x1ad   :  { %v259_v62 = vmul.f32 0.0625, %v245_v20  ;;  %v300_v63 = vmul.f32 0.0625, %v286_v59  ;;  %v336_v31 = vsel %vm335_vm6, %v334_v13, %v329_v28 }
 0x1af   :  { %v340_v7 = vrot.slane %v259_v62, %v314_v44  ;;  %v389_v8 = vrot.slane %v300_v63, %v314_v44 }
 0x1b0   :  { %v295_v14 = vpop.xlane.xlu1 %294  ;;  %v283_v15 = vpop.xlane.xlu0 %282 }
 0x1b1   :  { %v345_v16 = vsel %vm321_vm4, %v344_v60, %v340_v7  ;;  %v394_v17 = vsel %vm321_vm4, %v393_v1, %v389_v8  ;;  %v303_v18 = vmul.f32 0.0625, %v295_v14  ;;  %v299_v19 = vmul.f32 0.0625, %v283_v15 }
 0x1b2   :  { %v350_v23 = vsel %vm328_vm5, %v349_v6, %v345_v16  ;;  %v399_v30 = vsel %vm328_vm5, %v398_v22, %v394_v17 }
 0x1b3   :  { %v355_v25 = vsel %vm335_vm6, %v354_v12, %v350_v23  ;;  %v403_v26 = vrot.slane %v303_v18, %v333_v52  ;;  %v384_v27 = vrot.slane %v299_v19, %v333_v52 }
 0x1b4   :  { %v357_v35 = vsel %vm356_vm7, %v355_v25, %v336_v31 }
 0x1b5   :  { %v404_v32 = vsel %vm335_vm6, %v403_v26, %v399_v30  ;;  %v385_v33 = vsel %vm335_vm6, %v384_v27, %v380_v29 }
 0x1b6   :  { %v406_v34 = vsel %vm405_vm8, %v404_v32, %v385_v33 }
 0x1b7   :  { %v409_v37 = vsel %vm408_vm9, %v357_v35, %v406_v34 }
 0x1b8   :  { %668 = vmatmul.mubr.msk.f32.vlgmr.msra.gmra.mrb[6].mxu1 %vm22_vm0, %v409_v37 }
 0x1b9   :  { %671 = vmatpush3.msk.msra.mxu1 %vm408_vm9, %v488_v36  ;;  %672 = vmatprep.mubr.msk.f32.mxu1 %vm763_vm3, %v761_v0 }
 0x28b   :  { %v483_v38 = vpop.f32.mrb[6].mxu1 }
 0x28c   :  { %v487_v39 = vmax.f32 %v483_v38, 0.0  ;;  %v669_v40 = vpop.f32.mrb[7].mxu1 }
 0x28e   :  { %673 = vmatmul.mubr.msk.f32.vlgmr.msra.gmra.mrb[8].mxu1 %vm489_vm10, %v487_v39 }
 0x361   :  { %v562_v41 = vpop.f32.mrb[8].mxu1 }
 0x362   :  { %v567_v42 = vrot.slane %v562_v41, 2  ;;  %v674_v43 = vpop.f32.mrb[9].mxu1 }
 0x364   :  { %v569_v44 = vadd.f32 %v567_v42, %v562_v41 }
 0x366   :  { %v595_v45 = vmul.f32 -1.442695, %v569_v44 }
 0x368   :  { %733 = vpow2.f32 %v595_v45 }
 0x372   :  { %v734_v46 = vpop.eup %733 }
 0x373   :  { %v573_v47 = vadd.f32 1.0, %v734_v46 }
 0x375   :  { %735 = vrcp.f32 %v573_v47 }
 0x37f   :  { %v736_v48 = vpop.eup %735 }
 0x380   :  { %577 = vst.msk [vmem:[#allocation3] sm:$0x3] %vm576_vm11, %v736_v48 }
 0x381   :  { %748 = shalt.err (!%p745_p4)
}
 0x382   :  { %s749_s17 = scalar_lea.hbm %s1066_s4, 32 }
 0x383   :  { %p750_p5 = scmp.ne.s32.totalorder %s1066_s4, %s749_s17  ;;  %p753_p6 = scmp.lt.u32.totalorder %s749_s17, %s1066_s4 }
 0x385   :  { %p755_p7 = pnand %p753_p6, %p750_p5 }
 0x387   :  { %758 = shalt.err (!%p755_p7)
}
 0x388   :  { %587 = dma.vmem_to_hbm [thread:$0]  %s585_s13, 32, %s1066_s4, [#allocation4]  }
 0x389   :  { %759 = dma.done.wait [#allocation4], 32  }
 0x38a   :  { %760 = vsyncadd [#allocation4], 4294967264 }
 0x38b   :  { %591 = vsyncpa [#allocation4], 1 }

</bundles_post_ra>
